<compile_context>
chip_gen: v5e
topology: v5e:2x2
jax: 0.10.0
libtpu: 0.0.40
codegen_flags: <defaults>
</compile_context>

<pallas_src>
import functools

import jax
import jax.numpy as jnp
import numpy as np
from jax.experimental import pallas as pl
from jax.experimental.pallas import tpu as pltpu

# TODO(synk): the `transformers.utils.ModelOutput` unwrapping branch
# (x.last_hidden_state[:, 0, :]) is host-side input preprocessing outside the kernel.


def _selective_activation_kernel(x_ref, w_ref, b_ref, out_ref, *, activation):
    x = x_ref[...]                                                    # (TB, F) block in VMEM
    f = x.shape[-1]
    # linear(x[:, indices]) == sum(x * w_eff) — VPU multiply + lane reduce, f32 accumulation.
    # (Avoids a 1-wide MXU matmul whose output pads to 128/256 lanes and a (F,1) weight
    #  that would be laid out 1 lane wide.)
    z = jnp.sum(x.astype(jnp.float32) * w_ref[...], axis=-1, keepdims=True)   # (TB, 1) f32
    a = activation(z + b_ref[0])                                      # scalar bias from SMEM

    if f % 128 == 0:
        # Lane-aligned: build the full (TB, F+1) block in registers and store it once
        # (the extra column lands at a 128-lane boundary, so the concat is cheap).
        out_ref[...] = jnp.concatenate([x, a.astype(x.dtype)], axis=-1).astype(out_ref.dtype)
    else:
        # Misaligned lane width: wide pass-through store plus one 1-wide masked column store.
        out_ref[:, :f] = x.astype(out_ref.dtype)
        out_ref[:, f:] = a.astype(out_ref.dtype)


def _pick_block_rows(B, F):
    """Rows per block: whole batch when small, else a multiple of 8 sized so each
    block is ~4 MiB (double-buffered in+out working set ~16 MiB, inside the raised
    32 MiB scoped-VMEM limit) while amortizing the ~0.35 us/step grid overhead."""
    target_rows = max(8, (4 * 1024 * 1024) // (4 * (F + 1)))          # ~4 MiB per block
    target_rows = min(target_rows, 4096)
    if B <= target_rows:
        return B                                                      # full-extent block: always legal
    return (target_rows // 8) * 8                                     # multiple of 8 sublanes


def selective_activation(x, w_eff, bias_scalar, activation=jnp.tanh, block_rows=None):
    B, F = x.shape
    w_row = jnp.asarray(w_eff, jnp.float32).reshape(1, F)             # lane-dense weight row
    b_arr = jnp.asarray(bias_scalar, jnp.float32).reshape((1,))
    TB = _pick_block_rows(B, F) if block_rows is None else min(int(block_rows), B)
    kernel = functools.partial(_selective_activation_kernel, activation=activation)
    return pl.pallas_call(
        kernel,
        out_shape=jax.ShapeDtypeStruct((B, F + 1), x.dtype),
        grid=(pl.cdiv(B, TB),),                                       # batch-tiled, pipelined
        in_specs=[
            pl.BlockSpec((TB, F), lambda i: (i, 0)),                  # x tile
            pl.BlockSpec((1, F), lambda i: (0, 0)),                   # weight row, VMEM-resident
            pl.BlockSpec(memory_space=pltpu.MemorySpace.SMEM),        # scalar bias / param
        ],
        out_specs=pl.BlockSpec((TB, F + 1), lambda i: (i, 0)),
        compiler_params=pltpu.CompilerParams(
            dimension_semantics=("parallel",),                        # shard batch over v7x's 2 TCs
            vmem_limit_bytes=32 * 1024 * 1024,                        # headroom for 4 MiB blocks x2 bufs
        ),
    )(x, w_row, b_arr)


def make_params(indices, num_features, key, bias=False):
    """Deterministic synthetic init mirroring SelectiveActivation.__init__."""
    indices = np.asarray(indices, dtype=np.int32)
    if indices.size == 0:
        # self.linear = nn.Parameter(torch.ones(1)); forward uses ones(B,1) * linear
        # => equivalent to x @ 0 + 1.0
        return jnp.zeros((num_features,), jnp.float32), jnp.float32(1.0)
    k = int(indices.size)
    bound = 1.0 / np.sqrt(k)                                          # nn.Linear default init range
    kw, kb = jax.random.split(key)
    w = jax.random.uniform(kw, (k,), jnp.float32, -bound, bound)      # nn.Linear(k, 1).weight
    w_eff = jnp.zeros((num_features,), jnp.float32).at[indices].set(w)
    if bias:
        b = jax.random.uniform(kb, (), jnp.float32, -bound, bound)
    else:
        b = jnp.float32(0.0)
    return w_eff, b


def _reference(x, w_eff, b, activation=jnp.tanh):
    z = x @ jnp.reshape(w_eff, (-1, 1)) + b
    return jnp.concatenate([x, activation(z)], axis=1)


if __name__ == "__main__":
    key = jax.random.PRNGKey(0)
    kx, kp, kx2, kp2 = jax.random.split(key, 4)
    activation = jnp.tanh                                             # example activation choice

    # Case 1: small shape, non-empty indices (nn.Linear(len(indices), 1, bias=False) path).
    B, F = 2, 32
    indices = [1, 3, 7, 12, 21]
    x = jax.random.normal(kx, (B, F), jnp.float32)
    w_eff, b = make_params(indices, F, kp, bias=False)
    out = jax.block_until_ready(selective_activation(x, w_eff, b, activation))
    ref = _reference(x, w_eff, b, activation)
    assert out.shape == (B, F + 1)
    np.testing.assert_allclose(np.asarray(out), np.asarray(ref), rtol=1e-5, atol=1e-5)

    # Case 2: empty indices (scalar nn.Parameter path: activation(ones(B,1) * 1.0)).
    w_eff0, b0 = make_params([], F, kp)
    out0 = jax.block_until_ready(selective_activation(x, w_eff0, b0, activation))
    ref0 = _reference(x, w_eff0, b0, activation)
    np.testing.assert_allclose(np.asarray(out0), np.asarray(ref0), rtol=1e-5, atol=1e-5)

    # Case 3: exercises the tiled/pipelined path: multi-step grid, a partial last batch
    # block (masked writeback), lane-aligned F (single lane-dense output store).
    B2, F2 = 50, 128
    indices2 = [0, 5, 17, 64, 100, 127]
    x2 = jax.random.normal(kx2, (B2, F2), jnp.float32)
    w_eff2, b2 = make_params(indices2, F2, kp2, bias=True)
    out2 = jax.block_until_ready(selective_activation(x2, w_eff2, b2, activation, block_rows=16))
    ref2 = _reference(x2, w_eff2, b2, activation)
    assert out2.shape == (B2, F2 + 1)
    np.testing.assert_allclose(np.asarray(out2), np.asarray(ref2), rtol=1e-5, atol=1e-5)

    print("KERNEL_OK")
</pallas_src>

<mosaic_0001>
module attributes {stable_mosaic.version = 11 : i64} {
  func.func @_selective_activation_kernel(%arg0: i32, %arg1: memref<2x32xf32, #tpu.memory_space<vmem>>, %arg2: memref<1x32xf32, #tpu.memory_space<vmem>>, %arg3: memref<1xf32, #tpu.memory_space<smem>>, %arg4: memref<2x33xf32, #tpu.memory_space<vmem>>) attributes {dimension_semantics = [#tpu.dimension_semantics<parallel>], iteration_bounds = array<i64: 1>, scalar_prefetch = 0 : i64, scratch_operands = 0 : i64, tpu.core_type = #tpu.core_type<tc>, window_params = [{transform_indices = @transform_0, window_bounds = array<i64: 2, 32>}, {pipeline_mode = #tpu.pipeline_mode<synchronous>, transform_indices = @transform_1, window_bounds = array<i64: 1, 32>}, {transform_indices = @transform_2, window_bounds = array<i64: 1>}, {transform_indices = @transform_3, window_bounds = array<i64: 2, 33>}]} {
    %c0 = arith.constant 0 : index
    %c0_0 = arith.constant 0 : index
    %0 = vector.load %arg1[%c0, %c0_0] : memref<2x32xf32, #tpu.memory_space<vmem>>, vector<2x32xf32>
    %c0_1 = arith.constant 0 : index
    %c0_2 = arith.constant 0 : index
    %1 = vector.load %arg2[%c0_1, %c0_2] : memref<1x32xf32, #tpu.memory_space<vmem>>, vector<1x32xf32>
    %2 = vector.broadcast %1 : vector<1x32xf32> to vector<2x32xf32>
    %3 = arith.mulf %0, %2 : vector<2x32xf32>
    %cst = arith.constant dense<0.000000e+00> : vector<2xf32>
    %4 = vector.multi_reduction <add>, %3, %cst [1] : vector<2x32xf32> to vector<2xf32>
    %5 = vector.shape_cast %4 : vector<2xf32> to vector<2x1xf32>
    %c0_3 = arith.constant 0 : index
    %6 = memref.load %arg3[%c0_3] : memref<1xf32, #tpu.memory_space<smem>>
    %7 = vector.broadcast %6 : f32 to vector<2x1xf32>
    %8 = arith.addf %5, %7 : vector<2x1xf32>
    %9 = math.tanh %8 : vector<2x1xf32>
    %c0_4 = arith.constant 0 : index
    %c0_5 = arith.constant 0 : index
    %10 = vector.load %arg4[%c0_4, %c0_5] : memref<2x33xf32, #tpu.memory_space<vmem>>, vector<2x32xf32>
    tpu.vector_store %arg4[%c0_4, %c0_5], %0 {strides = array<i32>} : memref<2x33xf32, #tpu.memory_space<vmem>>, vector<2x32xf32>,
    %c0_6 = arith.constant 0 : index
    %c32 = arith.constant 32 : index
    %11 = vector.load %arg4[%c0_6, %c32] : memref<2x33xf32, #tpu.memory_space<vmem>>, vector<2x1xf32>
    tpu.vector_store %arg4[%c0_6, %c32], %9 {strides = array<i32>} : memref<2x33xf32, #tpu.memory_space<vmem>>, vector<2x1xf32>,
    return
  }
  func.func @transform_0(%arg0: i32) -> (i32, i32) {
    %c0_i32 = arith.constant 0 : i32
    %c0_i32_0 = arith.constant 0 : i32
    return %arg0, %c0_i32 : i32, i32
  }
  func.func @transform_1(%arg0: i32) -> (i32, i32) {
    %c0_i32 = arith.constant 0 : i32
    %c0_i32_0 = arith.constant 0 : i32
    %c0_i32_1 = arith.constant 0 : i32
    return %c0_i32, %c0_i32_0 : i32, i32
  }
  func.func @transform_2(%arg0: i32) -> i32 {
    %c0_i32 = arith.constant 0 : i32
    %c0_i32_0 = arith.constant 0 : i32
    return %c0_i32 : i32
  }
  func.func @transform_3(%arg0: i32) -> (i32, i32) {
    %c0_i32 = arith.constant 0 : i32
    %c0_i32_0 = arith.constant 0 : i32
    return %arg0, %c0_i32 : i32, i32
  }
}

</mosaic_0001>

<bundles_post_ra>
// kernel: tpu_custom_call.1
= control target key start
LH: loop header
LB: loop body
LE: loop exit
PB: predicated region body
PF: predicated region fallthrough
CT: control target
= control target key end

     0   :  { %9 = vsyncpa [#allocation4], 0  ;;  %s155_s0 = inlined_call_operand.vmem [shape: f32[2,32], index: 0, kind: input, shape index: {}]   ;;  %s156_s1 = inlined_call_operand.hbm [shape: f32[1,32], index: 1, kind: input, shape index: {}]   ;;  %s157_s2 = inlined_call_operand.<no memory space> [shape: f32[1], index: 2, kind: input, shape index: {}]   ;;  %s158_s3 = inlined_call_operand.hbm [shape: f32[2,33], index: 3, kind: output, shape index: {}]  }
   0x1   :  { %10 = vsyncpa [#allocation5], 0  ;;  %s18_s14 = sshll.u32 %s156_s1, 4  ;;  %s121_s15 = smov [#allocation3]   ;;  %s19_s14 = int_to_ptr.hbm [resolvable:$true] %s18_s14 }
   0x2   :  { %s20_s16 = sshll.u32 %s121_s15, 4  ;;  %s21_s16 = int_to_ptr.vmem [resolvable:$true] %s20_s16 }
   0x3   :  { %23 = dma.hbm_to_vmem [thread:$0]  %s19_s14, 16, %s21_s16, [#allocation4]  }
   0x4   :  { %117 = dma.done.wait [#allocation4], 16  }
   0x5   :  { %118 = vsyncadd [#allocation4], 4294967280  ;;  %vm36_vm0 = vcmask 254976   ;;  %v30_v0 = vld [vmem:[%s155_s0] sm:$0x3]  ;;  %v41_v4 = vstv %s157_s2  ;;  %s122_s1 = smov [#allocation6]  }
   0x6   :  { %v66_v1 = vld [vmem:[#allocation3] ss:$0 sm:$0xff]  ;;  %44 = vst.msk [vmem:[#allocation6] sm:$0x3] %vm36_vm0, %v30_v0  ;;  %s52_s21 = sshll.u32 %s122_s1, 4  ;;  %s54_s24 = sshll.u32 %s158_s3, 4  ;;  %s53_s21 = int_to_ptr.vmem [resolvable:$true] %s52_s21  ;;  %s55_s24 = int_to_ptr.hbm [resolvable:$true] %s54_s24 }
   0x7   :  { %v35_v2 = vmul.f32 %v66_v1, %v30_v0  ;;  %vm45_vm1 = vcmask 263424  }
   0x9   :  { %v37_v3 = vsel %vm36_vm0, %v35_v2, 0.0 }
   0xa   :  { %38 = vadd.xlane.f32.xlu0 %v37_v3 }
  0x7d   :  { %v39_v5 = vpop.xlane.xlu0 %38 }
  0x7e   :  { %v42_v6 = vadd.f32 %v41_v4, %v39_v5 }
  0x80   :  { %67 = vtanh.f32 %v42_v6 }
  0x86   :  { %v68_v7 = vpop.eup %67 }
  0x87   :  { %46 = vst.msk [vmem:[#allocation6] sm:$0x3] %vm45_vm1, %v68_v7 }
  0x88   :  { %57 = dma.vmem_to_hbm [thread:$0]  %s53_s21, 32, %s55_s24, [#allocation5]  }
  0x89   :  { %119 = dma.done.wait [#allocation5], 32  }
  0x8a   :  { %120 = vsyncadd [#allocation5], 4294967264 }
  0x8b   :  { %62 = vsyncpa [#allocation4], 1 }
  0x8c   :  { %63 = vsyncpa [#allocation5], 1 }

</bundles_post_ra>
